<compile_context>
chip_gen: v7x
topology: tpu7x:2x2x1
jax: 0.10.0
libtpu: 0.0.40
codegen_flags: <defaults>
</compile_context>

<pallas_src>
import math

import jax
import jax.numpy as jnp
from jax.experimental import pallas as pl
from jax.experimental.pallas import tpu as pltpu

HIDDEN = 32     # hidden_channels
BATCH = 2       # number of graphs / samples
NODES = 8       # reduced dimension (dim=1 of the input)


def interaction_gcn_kernel(x_ref, w_ref, b_ref, o_ref):
    # x_ref: (tb, K)     f32  lane-dense packed input block (K = P*N*H)
    # w_ref: (K, P*H)    f32  mean-folded, P-block-diagonal weight (resident)
    # b_ref: (1, P*H)    f32  P-tiled bias (resident)
    # o_ref: (tb, P*H)   f32  lane-dense packed output block
    # One fused MXU matmul with f32 accumulation; the mean is baked into w_ref.
    o_ref[...] = (
        jnp.dot(x_ref[...], w_ref[...], preferred_element_type=jnp.float32)
        + b_ref[...]
    )


def _choose_row_tile(rows, row_bytes, target_block_bytes=2 << 20):
    """Pick the batch tile (in packed rows).

    Multiple of 8 (sublane rule on the (tb, K) / (tb, P*H) blocks), sized for
    ~2 MiB input blocks (double-buffered input + output stays far below the
    scoped-VMEM default on v5e/v6e/v7x), and capped at rows//2 so the
    'parallel' batch axis keeps >= 2 grid steps for megacore sharding.
    """
    if rows <= 8:
        return rows                     # tiny batch: one block covers everything
    tb = min(rows // 2, max(1, target_block_bytes // row_bytes))
    tb = (tb // 8) * 8
    return max(8, tb)


def interaction_gcn(inputs, weight, bias):
    """inputs: (B, N, H) f32; weight: (H, H) torch layout (out, in); bias: (H,) f32.

    Returns (B, 1, H) f32, matching `fc(inputs.mean(dim=1, keepdim=True))`.
    """
    B, N, H = inputs.shape
    inputs = inputs.astype(jnp.float32)

    # Pack P batch rows per kernel row so the lane dims (K and P*H) are as
    # 128-dense as possible.  P=1 falls back to the unpacked layout.
    P = math.gcd(B, 128 // H) if (H <= 128 and 128 % H == 0) else 1
    rows = B // P
    K = P * N * H                    # input lane dim (512 at demo sizes)
    HOUT = P * H                     # output lane dim

    # Free row-major reshape to the lane-dense packed layout.
    x2 = inputs.reshape(rows, K)

    # Fold the mean into the weight: y = x2 @ W_big + b_big.
    w_t = weight.T.astype(jnp.float32)                    # (H_in, H_out)
    w_exp = jnp.tile(w_t, (N, 1)) / float(N)              # (N*H, H)
    if P > 1:
        w_big = jnp.kron(jnp.eye(P, dtype=jnp.float32), w_exp)   # (K, P*H) block-diag
        b_big = jnp.tile(bias.astype(jnp.float32), (P,))          # (P*H,)
    else:
        w_big = w_exp
        b_big = bias.astype(jnp.float32)
    b_big = b_big.reshape(1, HOUT)

    # Batch tiling: big tiles, multiple of 8, >= 2 grid steps when batch allows.
    tb = _choose_row_tile(rows, K * 4)
    rows_padded = pl.cdiv(rows, tb) * tb
    if rows_padded != rows:
        # Zero-pad the packed batch; padded rows just produce the bias and are
        # sliced off below (no divisibility assert needed).
        x2 = jnp.pad(x2, ((0, rows_padded - rows), (0, 0)))
    grid = (rows_padded // tb,)

    flops = 2 * rows_padded * K * HOUT
    bytes_accessed = 4 * (rows_padded * K + K * HOUT + HOUT + rows_padded * HOUT)

    out = pl.pallas_call(
        interaction_gcn_kernel,
        out_shape=jax.ShapeDtypeStruct((rows_padded, HOUT), jnp.float32),
        grid=grid,
        in_specs=[
            pl.BlockSpec((tb, K), lambda i: (i, 0)),       # streamed input tiles
            pl.BlockSpec((K, HOUT), lambda i: (0, 0)),     # resident weight
            pl.BlockSpec((1, HOUT), lambda i: (0, 0)),     # resident bias
        ],
        out_specs=pl.BlockSpec((tb, HOUT), lambda i: (i, 0)),
        compiler_params=pltpu.CompilerParams(
            dimension_semantics=("parallel",),
        ),
        cost_estimate=pl.CostEstimate(
            flops=flops, transcendentals=0, bytes_accessed=bytes_accessed
        ),
    )(x2, w_big, b_big)

    out = out[:rows]                      # drop batch padding (no-op if none)
    return out.reshape(B, 1, H)           # unpack P rows + keepdim, free reshape


if __name__ == "__main__":
    key = jax.random.PRNGKey(0)
    k_x, k_w, k_b = jax.random.split(key, 3)

    # Torch-layout parameters: weight is (out_features, in_features).
    weight = jax.random.normal(k_w, (HIDDEN, HIDDEN), dtype=jnp.float32) * 0.1
    bias = jax.random.normal(k_b, (HIDDEN,), dtype=jnp.float32) * 0.1

    inputs = jax.random.normal(k_x, (BATCH, NODES, HIDDEN), dtype=jnp.float32)

    out = interaction_gcn(inputs, weight, bias)
    out = jax.block_until_ready(out)

    # Pure-JAX reference mirroring the PyTorch forward exactly.
    ref = jnp.mean(inputs, axis=1, keepdims=True) @ weight.T + bias
    assert out.shape == (BATCH, 1, HIDDEN)
    assert jnp.allclose(out, ref, atol=1e-5, rtol=1e-5)

    print("KERNEL_OK")
</pallas_src>

<mosaic_0001>
module attributes {stable_mosaic.version = 11 : i64} {
  func.func @interaction_gcn_kernel(%arg0: i32, %arg1: memref<1x512xf32, #tpu.memory_space<vmem>>, %arg2: memref<512x64xf32, #tpu.memory_space<vmem>>, %arg3: memref<1x64xf32, #tpu.memory_space<vmem>>, %arg4: memref<1x64xf32, #tpu.memory_space<vmem>>) attributes {dimension_semantics = [#tpu.dimension_semantics<parallel>], iteration_bounds = array<i64: 1>, scalar_prefetch = 0 : i64, scratch_operands = 0 : i64, tpu.core_type = #tpu.core_type<tc>, window_params = [{transform_indices = @transform_0, window_bounds = array<i64: 1, 512>}, {pipeline_mode = #tpu.pipeline_mode<synchronous>, transform_indices = @transform_1, window_bounds = array<i64: 512, 64>}, {pipeline_mode = #tpu.pipeline_mode<synchronous>, transform_indices = @transform_2, window_bounds = array<i64: 1, 64>}, {transform_indices = @transform_3, window_bounds = array<i64: 1, 64>}]} {
    %c0 = arith.constant 0 : index
    %c0_0 = arith.constant 0 : index
    %0 = vector.load %arg1[%c0, %c0_0] : memref<1x512xf32, #tpu.memory_space<vmem>>, vector<1x512xf32>
    %c0_1 = arith.constant 0 : index
    %c0_2 = arith.constant 0 : index
    %1 = vector.load %arg2[%c0_1, %c0_2] : memref<512x64xf32, #tpu.memory_space<vmem>>, vector<512x64xf32>
    %cst = arith.constant dense<0.000000e+00> : vector<1x64xf32>
    %2 = tpu.matmul %0, %1, %cst {dimension_numbers = #tpu.dot_dimension_numbers<[1], [0], [0], [1], [0, 0, 1, 1], [], []>} : vector<1x512xf32>, vector<512x64xf32>, vector<1x64xf32> -> vector<1x64xf32>
    %c0_3 = arith.constant 0 : index
    %c0_4 = arith.constant 0 : index
    %3 = vector.load %arg3[%c0_3, %c0_4] : memref<1x64xf32, #tpu.memory_space<vmem>>, vector<1x64xf32>
    %4 = arith.addf %2, %3 : vector<1x64xf32>
    %c0_5 = arith.constant 0 : index
    %c0_6 = arith.constant 0 : index
    %5 = vector.load %arg4[%c0_5, %c0_6] : memref<1x64xf32, #tpu.memory_space<vmem>>, vector<1x64xf32>
    tpu.vector_store %arg4[%c0_5, %c0_6], %4 {strides = array<i32>} : memref<1x64xf32, #tpu.memory_space<vmem>>, vector<1x64xf32>,
    return
  }
  func.func @transform_0(%arg0: i32) -> (i32, i32) {
    %c0_i32 = arith.constant 0 : i32
    %c0_i32_0 = arith.constant 0 : i32
    return %arg0, %c0_i32 : i32, i32
  }
  func.func @transform_1(%arg0: i32) -> (i32, i32) {
    %c0_i32 = arith.constant 0 : i32
    %c0_i32_0 = arith.constant 0 : i32
    %c0_i32_1 = arith.constant 0 : i32
    return %c0_i32, %c0_i32_0 : i32, i32
  }
  func.func @transform_2(%arg0: i32) -> (i32, i32) {
    %c0_i32 = arith.constant 0 : i32
    %c0_i32_0 = arith.constant 0 : i32
    %c0_i32_1 = arith.constant 0 : i32
    return %c0_i32, %c0_i32_0 : i32, i32
  }
  func.func @transform_3(%arg0: i32) -> (i32, i32) {
    %c0_i32 = arith.constant 0 : i32
    %c0_i32_0 = arith.constant 0 : i32
    return %arg0, %c0_i32 : i32, i32
  }
}

</mosaic_0001>

<bundles_post_ra>
// kernel: tpu_custom_call.1
= control target key start
LH: loop header
LB: loop body
LE: loop exit
PB: predicated region body
PF: predicated region fallthrough
CT: control target
= control target key end

     0   :  { %v82_v47 = vlaneseq  ;;  %s654_s0 = inlined_call_operand.vmem [shape: f32[1,512], index: 0, kind: input, shape index: {}]   ;;  %s655_s1 = inlined_call_operand.vmem [shape: f32[512,64], index: 1, kind: input, shape index: {}]   ;;  %s656_s2 = inlined_call_operand.vmem [shape: f32[1,64], index: 2, kind: input, shape index: {}]   ;;  %s657_s3 = inlined_call_operand.hbm [shape: f32[1,64], index: 3, kind: output, shape index: {}]  }
   0x1   :  { %v32_v0 = vld [vmem:[%s655_s1 + $0x80] sm:$0xff]  ;;  %v33_v1 = vld [vmem:[%s655_s1 + $0x88] sm:$0xff]  ;;  %v34_v11 = vld [vmem:[%s655_s1 + $0x90] sm:$0xff] }
   0x2   :  { %v16_v2 = vld [vmem:[%s655_s1] sm:$0xff]  ;;  %v328_v3 = vpack.c.bf16 %v33_v1, %v32_v0  ;;  %v17_v4 = vld [vmem:[%s655_s1 + $0x8] sm:$0xff]  ;;  %v35_v13 = vld [vmem:[%s655_s1 + $0x98] sm:$0xff]  ;;  %v564_v61 = vshrl.u32 %v82_v47, 7 }
   0x3   :  { %v64_v5 = vld [vmem:[%s655_s1 + $0x180] sm:$0xff]  ;;  %v65_v6 = vld [vmem:[%s655_s1 + $0x188] sm:$0xff]  ;;  %v330_v7 = vpack.c.bf16 %v17_v4, %v16_v2  ;;  %v18_v14 = vld [vmem:[%s655_s1 + $0x10] sm:$0xff]  ;;  %v332_v16 = vpack.c.bf16 %v35_v13, %v34_v11 }
   0x4   :  { %v360_v8 = vpack.c.bf16 %v65_v6, %v64_v5  ;;  %v48_v9 = vld [vmem:[%s655_s1 + $0x100] sm:$0xff]  ;;  %v49_v10 = vld [vmem:[%s655_s1 + $0x108] sm:$0xff]  ;;  %329 = vmatprep.subr.bf16.mxu0 %v328_v3  ;;  %v19_v15 = vld [vmem:[%s655_s1 + $0x18] sm:$0xff]  ;;  %v96_v11 = vsub.s32 3, %v564_v61 }
   0x5   :  { %v362_v12 = vpack.c.bf16 %v49_v10, %v48_v9  ;;  %331 = vmatpush3.bf16.msra.mxu0 %v330_v7  ;;  %v334_v17 = vpack.c.bf16 %v19_v15, %v18_v14  ;;  %v66_v18 = vld [vmem:[%s655_s1 + $0x190] sm:$0xff]  ;;  %v67_v19 = vld [vmem:[%s655_s1 + $0x198] sm:$0xff]  ;;  %v36_v23 = vld [vmem:[%s655_s1 + $0xa0] sm:$0xff]  ;;  %v88_v10 = vsub.s32 1, %v564_v61 }
   0x6   :  { %361 = vmatprep.subr.bf16.mxu1 %v360_v8  ;;  %v50_v20 = vld [vmem:[%s655_s1 + $0x110] sm:$0xff]  ;;  %v364_v21 = vpack.c.bf16 %v67_v19, %v66_v18  ;;  %v51_v22 = vld [vmem:[%s655_s1 + $0x118] sm:$0xff]  ;;  %v37_v24 = vld [vmem:[%s655_s1 + $0xa8] sm:$0xff]  ;;  %333 = vmatprep.subr.bf16.mxu0 %v332_v16 }
   0x7   :  { %363 = vmatpush3.bf16.msra.mxu1 %v362_v12  ;;  %v366_v25 = vpack.c.bf16 %v51_v22, %v50_v20  ;;  %v336_v26 = vpack.c.bf16 %v37_v24, %v36_v23  ;;  %v20_v27 = vld [vmem:[%s655_s1 + $0x20] sm:$0xff]  ;;  %v21_v28 = vld [vmem:[%s655_s1 + $0x28] sm:$0xff]  ;;  %v38_v35 = vld [vmem:[%s655_s1 + $0xb0] sm:$0xff] }
   0x8   :  { %v68_v29 = vld [vmem:[%s655_s1 + $0x1a0] sm:$0xff]  ;;  %365 = vmatprep.subr.bf16.mxu1 %v364_v21  ;;  %v69_v30 = vld [vmem:[%s655_s1 + $0x1a8] sm:$0xff]  ;;  %v338_v33 = vpack.c.bf16 %v21_v28, %v20_v27  ;;  %v39_v36 = vld [vmem:[%s655_s1 + $0xb8] sm:$0xff] }
   0x9   :  { %v52_v31 = vld [vmem:[%s655_s1 + $0x120] sm:$0xff]  ;;  %v53_v32 = vld [vmem:[%s655_s1 + $0x128] sm:$0xff]  ;;  %335 = vmatpush3.bf16.msra.mxu0 %v334_v17  ;;  %v368_v34 = vpack.c.bf16 %v69_v30, %v68_v29  ;;  %v22_v37 = vld [vmem:[%s655_s1 + $0x30] sm:$0xff]  ;;  %v340_v39 = vpack.c.bf16 %v39_v36, %v38_v35 }
   0xa   :  { %337 = vmatprep.subr.bf16.mxu0 %v336_v26  ;;  %v370_v38 = vpack.c.bf16 %v53_v32, %v52_v31  ;;  %v23_v40 = vld [vmem:[%s655_s1 + $0x38] sm:$0xff]  ;;  %v70_v41 = vld [vmem:[%s655_s1 + $0x1b0] sm:$0xff]  ;;  %v40_v46 = vld [vmem:[%s655_s1 + $0xc0] sm:$0xff] }
   0xb   :  { %367 = vmatpush3.bf16.msra.mxu1 %v366_v25  ;;  %v71_v42 = vld [vmem:[%s655_s1 + $0x1b8] sm:$0xff]  ;;  %v54_v44 = vld [vmem:[%s655_s1 + $0x130] sm:$0xff]  ;;  %v41_v48 = vld [vmem:[%s655_s1 + $0xc8] sm:$0xff]  ;;  %v342_v49 = vpack.c.bf16 %v23_v40, %v22_v37 }
   0xc   :  { %369 = vmatprep.subr.bf16.mxu1 %v368_v34  ;;  %v372_v43 = vpack.c.bf16 %v71_v42, %v70_v41  ;;  %v55_v45 = vld [vmem:[%s655_s1 + $0x138] sm:$0xff]  ;;  %v72_v50 = vld [vmem:[%s655_s1 + $0x1c0] sm:$0xff]  ;;  %v73_v51 = vld [vmem:[%s655_s1 + $0x1c8] sm:$0xff]  ;;  %v344_v53 = vpack.c.bf16 %v41_v48, %v40_v46 }
   0xd   :  { %339 = vmatpush3.bf16.msra.mxu0 %v338_v33  ;;  %v374_v52 = vpack.c.bf16 %v55_v45, %v54_v44  ;;  %v24_v54 = vld [vmem:[%s655_s1 + $0x40] sm:$0xff]  ;;  %v25_v55 = vld [vmem:[%s655_s1 + $0x48] sm:$0xff]  ;;  %v376_v57 = vpack.c.bf16 %v73_v51, %v72_v50  ;;  %v42_v59 = vld [vmem:[%s655_s1 + $0xd0] sm:$0xff] }
   0xe   :  { %341 = vmatprep.subr.bf16.mxu0 %v340_v39  ;;  %v56_v56 = vld [vmem:[%s655_s1 + $0x140] sm:$0xff]  ;;  %v57_v58 = vld [vmem:[%s655_s1 + $0x148] sm:$0xff]  ;;  %v43_v60 = vld [vmem:[%s655_s1 + $0xd8] sm:$0xff]  ;;  %v346_v0 = vpack.c.bf16 %v25_v55, %v24_v54 }
   0xf   :  { %371 = vmatpush3.bf16.msra.mxu1 %v370_v38  ;;  %v74_v62 = vld [vmem:[%s655_s1 + $0x1d0] sm:$0xff]  ;;  %v75_v63 = vld [vmem:[%s655_s1 + $0x1d8] sm:$0xff]  ;;  %v378_v1 = vpack.c.bf16 %v57_v58, %v56_v56  ;;  %v348_v2 = vpack.c.bf16 %v43_v60, %v42_v59  ;;  %v44_v8 = vld [vmem:[%s655_s1 + $0xe0] sm:$0xff] }
  0x10   :  { %373 = vmatprep.subr.bf16.mxu1 %v372_v43  ;;  %v26_v3 = vld [vmem:[%s655_s1 + $0x50] sm:$0xff]  ;;  %v27_v4 = vld [vmem:[%s655_s1 + $0x58] sm:$0xff]  ;;  %v380_v6 = vpack.c.bf16 %v75_v63, %v74_v62  ;;  %v45_v9 = vld [vmem:[%s655_s1 + $0xe8] sm:$0xff] }
  0x11   :  { %343 = vmatpush3.bf16.msra.mxu0 %v342_v49  ;;  %v58_v5 = vld [vmem:[%s655_s1 + $0x150] sm:$0xff]  ;;  %v59_v7 = vld [vmem:[%s655_s1 + $0x158] sm:$0xff]  ;;  %v76_v12 = vld [vmem:[%s655_s1 + $0x1e0] sm:$0xff]  ;;  %v350_v14 = vpack.c.bf16 %v27_v4, %v26_v3  ;;  %v352_v18 = vpack.c.bf16 %v45_v9, %v44_v8 }
  0x12   :  { %345 = vmatprep.subr.bf16.mxu0 %v344_v53  ;;  %v77_v13 = vld [vmem:[%s655_s1 + $0x1e8] sm:$0xff]  ;;  %v28_v15 = vld [vmem:[%s655_s1 + $0x60] sm:$0xff]  ;;  %v382_v17 = vpack.c.bf16 %v59_v7, %v58_v5 }
  0x13   :  { %375 = vmatpush3.bf16.msra.mxu1 %v374_v52  ;;  %v29_v16 = vld [vmem:[%s655_s1 + $0x68] sm:$0xff]  ;;  %v60_v19 = vld [vmem:[%s655_s1 + $0x160] sm:$0xff] }
  0x14   :  { %377 = vmatprep.subr.bf16.mxu1 %v376_v57  ;;  %v15_v20 = vld [vmem:[%s654_s0] sm:$0xf] }
  0x15   :  { %347 = vmatpush3.bf16.msra.mxu0 %v346_v0 }
  0x16   :  { %349 = vmatprep.subr.bf16.mxu0 %v348_v2 }
  0x17   :  { %379 = vmatpush3.bf16.msra.mxu1 %v378_v1 }
  0x18   :  { %8 = vsyncpa [#allocation3], 0  ;;  %381 = vmatprep.subr.bf16.mxu1 %v380_v6  ;;  %v384_v21 = vpack.c.bf16 %v77_v13, %v76_v12  ;;  %v61_v22 = vld [vmem:[%s655_s1 + $0x168] sm:$0xff]  ;;  %v46_v23 = vld [vmem:[%s655_s1 + $0xf0] sm:$0xff]  ;;  %v89_v25 = vrot.slane %v15_v20, %v88_v10  ;;  %v97_v26 = vrot.slane %v15_v20, %v96_v11  ;;  %v354_v29 = vpack.c.bf16 %v29_v16, %v28_v15  ;;  %s417_s7 = smov [#allocation2]  }
  0x19   :  { %v47_v24 = vld [vmem:[%s655_s1 + $0xf8] sm:$0xff]  ;;  %v78_v27 = vld [vmem:[%s655_s1 + $0x1f0] sm:$0xff]  ;;  %351 = vmatpush3.bf16.msra.mxu0 %v350_v14  ;;  %v386_v30 = vpack.c.bf16 %v61_v22, %v60_v19  ;;  %v84_v37 = vsub.s32 0, %v564_v61  ;;  %v92_v39 = vsub.s32 2, %v564_v61  ;;  %v80_v44 = vld [vmem:[%s656_s2] sm:$0x1] }
  0x1a   :  { %v79_v28 = vld [vmem:[%s655_s1 + $0x1f8] sm:$0xff]  ;;  %166 = vmatprep.mubr.f32.mxu0 %v89_v25  ;;  %353 = vmatprep.subr.bf16.mxu0 %v352_v18  ;;  %v356_v31 = vpack.c.bf16 %v47_v24, %v46_v23  ;;  %v30_v32 = vld [vmem:[%s655_s1 + $0x70] sm:$0xff]  ;;  %s250_s8 = sshll.u32 %s417_s7, 4  ;;  %vm242_vm0 = vcmask 516096   ;;  %s251_s8 = int_to_ptr.vmem [resolvable:$true] %s250_s8 }
  0x1b   :  { %383 = vmatpush3.bf16.msra.mxu1 %v382_v17  ;;  %v31_v33 = vld [vmem:[%s655_s1 + $0x78] sm:$0xff]  ;;  %v388_v34 = vpack.c.bf16 %v79_v28, %v78_v27  ;;  %v62_v35 = vld [vmem:[%s655_s1 + $0x170] sm:$0xff]  ;;  %236 = vmatprep.mubr.f32.mxu1 %v97_v26  ;;  %v85_v41 = vrot.slane %v15_v20, %v84_v37  ;;  %v93_v42 = vrot.slane %v15_v20, %v92_v39  ;;  %s393_s9 = scalar_lea.vmem %s251_s8, 16  ;;  %s397_s10 = scalar_lea.vmem %s251_s8, 32 }
  0x1c   :  { %385 = vmatprep.subr.bf16.mxu1 %v384_v21  ;;  %v63_v36 = vld [vmem:[%s655_s1 + $0x178] sm:$0xff]  ;;  %v358_v38 = vpack.c.bf16 %v31_v33, %v30_v32  ;;  %p394_p0 = scmp.ne.s32.totalorder %s251_s8, %s393_s9  ;;  %p398_p1 = scmp.lt.s32.totalorder %s251_s8, %s251_s8 }
  0x1d   :  { %355 = vmatpush3.bf16.msra.mxu0 %v354_v29  ;;  %v390_v40 = vpack.c.bf16 %v63_v36, %v62_v35  ;;  %p399_p2 = scmp.lt.s32.totalorder %s397_s10, %s393_s9 }
  0x1e   :  { %357 = vmatprep.subr.bf16.mxu0 %v356_v31 }
  0x1f   :  { %387 = vmatpush3.bf16.msra.mxu1 %v386_v30  ;;  %p400_p3 = por %p399_p2, %p398_p1 }
  0x20   :  { %389 = vmatprep.subr.bf16.mxu1 %v388_v34 }
  0x21   :  { %359 = vmatpush3.bf16.msra.mxu0 %v358_v38  ;;  %p401_p4 = pnand %p400_p3, %p394_p0 }
  0x23   :  { %391 = vmatpush3.bf16.msra.mxu1 %v390_v40 }
  0x24   :  { %167 = vmatmul.mubr.f32.vlgmr.msra.gmra.mrb[0].mxu0 %v85_v41 }
  0x26   :  { %237 = vmatmul.mubr.f32.vlgmr.msra.gmra.mrb[0].mxu1 %v93_v42 }
  0xf7   :  { %v290_v43 = vpop.f32.mrb[0].mxu0 }
  0xf8   :  { %v291_v45 = vpop.f32.mrb[1].mxu0 }
  0xf9   :  { %v325_v46 = vpop.f32.mrb[0].mxu1  ;;  %v292_v47 = vadd.f32 %v291_v45, %v290_v43 }
  0xfa   :  { %v326_v48 = vpop.f32.mrb[1].mxu1 }
  0xfb   :  { %v327_v49 = vadd.f32 %v326_v48, %v325_v46  ;;  %v169_v50 = vadd.f32 %v292_v47, %v80_v44 }
  0xfd   :  { %v239_v51 = vadd.f32 %v327_v49, %v169_v50 }
  0xff   :  { %243 = vst.msk [vmem:[#allocation2] sm:$0x1] %vm242_vm0, %v239_v51 }
 0x100   :  { %404 = shalt.err (!%p401_p4)
}
 0x101   :  { %s405_s12 = scalar_lea.hbm %s657_s3, 16 }
 0x102   :  { %p406_p5 = scmp.ne.s32.totalorder %s657_s3, %s405_s12  ;;  %p409_p6 = scmp.lt.u32.totalorder %s405_s12, %s657_s3 }
 0x104   :  { %p411_p7 = pnand %p409_p6, %p406_p5 }
 0x106   :  { %414 = shalt.err (!%p411_p7)
}
 0x107   :  { %253 = dma.vmem_to_hbm [thread:$0]  %s251_s8, 16, %s657_s3, [#allocation3]  }
 0x108   :  { %415 = dma.done.wait [#allocation3], 16  }
 0x109   :  { %416 = vsyncadd [#allocation3], 4294967280 }
 0x10a   :  { %257 = vsyncpa [#allocation3], 1 }

</bundles_post_ra>
